<compile_context>
chip_gen: v6e
topology: v6e:2x2x1
jax: 0.10.0
libtpu: 0.0.40
codegen_flags: <defaults>
</compile_context>

<pallas_src>
import jax
import jax.numpy as jnp
from jax.experimental import pallas as pl
from jax.experimental.pallas import tpu as pltpu

STATE_DIM = 4                # CartPole observation dim
ACTION_DIM = 2               # CartPole action space
HIDDEN = 128
FUSED_HIDDEN = 2 * HIDDEN    # actor hidden ++ critic hidden
PACK_ROWS = 8                # packed output rows: [p0, p1, value, 0, 0, 0, 0, 0]
LANE = 128                   # TPU lane width


def _round_up(x, m):
    return ((x + m - 1) // m) * m


def actor_critic_kernel(x_ref, w1t_ref, b1t_ref, w2p_ref, b2p_ref, out_ref):
    # Transposed ("batch in lanes") layout: x_ref is (STATE_DIM, tb).
    x = x_ref[...]                        # (4, tb)
    w1t = w1t_ref[...]                    # (256, 4)
    b1t = b1t_ref[...]                    # (256, 1)

    # ---- layer 1 (actor & critic fused): K=4 -> VPU broadcast-FMAs ----
    h = w1t[:, 0:1] * x[0:1, :] + b1t     # (256, tb)
    for k in range(1, STATE_DIM):         # static python loop, unrolled
        h = h + w1t[:, k:k + 1] * x[k:k + 1, :]
    h = jnp.maximum(h, 0.0)               # ReLU for both branches

    # ---- layer 2: (8, 256) @ (256, tb) -> (8, tb) on the MXU ----
    # Rows 0..1 = actor logits, row 2 = critic value, rows 3..7 exact zeros
    # (zero-padded packed weight/bias).
    y = jnp.dot(w2p_ref[...], h, preferred_element_type=jnp.float32)
    y = y + b2p_ref[...]                  # (8, tb) + (8, 1)

    # ---- 2-class softmax on rows 0..1 (element-wise, no cross-lane reduce) ----
    l0 = y[0:1, :]
    l1 = y[1:2, :]
    m = jnp.maximum(l0, l1)
    e0 = jnp.exp(l0 - m)
    e1 = jnp.exp(l1 - m)
    inv = pl.reciprocal(e0 + e1)          # exact; (1, tb) divide is negligible

    # Single lane-dense (8, tb) store, then overwrite the two prob rows.
    out_ref[...] = y
    out_ref[0:1, :] = e0 * inv
    out_ref[1:2, :] = e1 * inv


def fuse_params(params):
    """Fuse the four PyTorch-style Linear layers into packed kernel weights.

    Called ONCE (outside the per-step hot path)."""
    (w1a, b1a, w2a, b2a, w1c, b1c, w2c, b2c) = params
    w1t = jnp.concatenate([w1a, w1c], axis=1).T.astype(jnp.float32)     # (256, 4)
    b1t = jnp.concatenate([b1a, b1c]).reshape(-1, 1).astype(jnp.float32)  # (256, 1)

    w2p = jnp.zeros((PACK_ROWS, FUSED_HIDDEN), jnp.float32)
    w2p = w2p.at[0:ACTION_DIM, :HIDDEN].set(w2a.T)        # rows 0..1 <- actor head
    w2p = w2p.at[ACTION_DIM, HIDDEN:].set(w2c[:, 0])      # row 2    <- critic head

    b2p = jnp.zeros((PACK_ROWS, 1), jnp.float32)
    b2p = b2p.at[0:ACTION_DIM, 0].set(b2a.reshape(-1))
    b2p = b2p.at[ACTION_DIM, 0].set(b2c.reshape(-1)[0])
    return w1t, b1t, w2p, b2p


def _batch_tiling(B, block_b):
    """Pick the lane-tile size (multiple of 128) and padded batch."""
    b_pad = _round_up(max(B, 1), LANE)
    tb = max(LANE, min(_round_up(block_b, LANE), b_pad))
    # Guarantee >= 2 grid steps whenever possible so v7x's 2nd TensorCore
    # gets a share of the "parallel" batch axis.
    if b_pad // tb < 2 and b_pad >= 2 * LANE:
        tb = _round_up(pl.cdiv(b_pad, 2), LANE)
    b_pad = _round_up(b_pad, tb)
    return tb, b_pad


def make_actor_critic_forward(params, block_b=2048):
    """Fuse/pack weights once; return a jitted forward(x) -> (probs, value)."""
    w1t, b1t, w2p, b2p = fuse_params(params)

    @jax.jit
    def forward(x):                                   # x: (B, STATE_DIM)
        B = x.shape[0]
        tb, b_pad = _batch_tiling(B, block_b)
        xt = jnp.pad(x.T.astype(jnp.float32), ((0, 0), (0, b_pad - B)))  # (4, b_pad)

        packed = pl.pallas_call(
            actor_critic_kernel,
            out_shape=jax.ShapeDtypeStruct((PACK_ROWS, b_pad), jnp.float32),
            grid=(b_pad // tb,),
            in_specs=[
                pl.BlockSpec((STATE_DIM, tb), lambda i: (0, i)),  # x: batch in lanes
                pl.BlockSpec(w1t.shape, lambda i: (0, 0)),        # weights VMEM-resident
                pl.BlockSpec(b1t.shape, lambda i: (0, 0)),
                pl.BlockSpec(w2p.shape, lambda i: (0, 0)),
                pl.BlockSpec(b2p.shape, lambda i: (0, 0)),
            ],
            out_specs=pl.BlockSpec((PACK_ROWS, tb), lambda i: (0, i)),
            compiler_params=pltpu.CompilerParams(
                dimension_semantics=("parallel",)),
        )(xt, w1t, b1t, w2p, b2p)

        # Tiny (<= 3 x B) slices/transposes, fused under the same jit.
        probs = packed[0:ACTION_DIM, :B].T                       # (B, 2)
        value = packed[ACTION_DIM:ACTION_DIM + 1, :B].T          # (B, 1)
        return probs, value

    return forward


def init_params(key):
    # Matches the shapes / init style of the PyTorch module (W stored as (in, out)).
    ks = jax.random.split(key, 8)

    def lin(kw, kb, fan_in, fan_out):
        bound = 1.0 / jnp.sqrt(fan_in)
        w = jax.random.uniform(kw, (fan_in, fan_out), jnp.float32, -bound, bound)
        b = jax.random.uniform(kb, (fan_out,), jnp.float32, -bound, bound)
        return w, b

    w1a, b1a = lin(ks[0], ks[1], STATE_DIM, HIDDEN)
    w2a, b2a = lin(ks[2], ks[3], HIDDEN, ACTION_DIM)
    w1c, b1c = lin(ks[4], ks[5], STATE_DIM, HIDDEN)
    w2c, b2c = lin(ks[6], ks[7], HIDDEN, 1)
    return (w1a, b1a, w2a, b2a, w1c, b1c, w2c, b2c)


def reference_forward(x, params):
    (w1a, b1a, w2a, b2a, w1c, b1c, w2c, b2c) = params
    h_a = jnp.maximum(x @ w1a + b1a, 0.0)
    probs = jax.nn.softmax(h_a @ w2a + b2a, axis=-1)
    h_c = jnp.maximum(x @ w1c + b1c, 0.0)
    value = h_c @ w2c + b2c
    return probs, value


if __name__ == "__main__":
    key = jax.random.PRNGKey(0)
    k_x, k_x2, k_p = jax.random.split(key, 3)
    params = init_params(k_p)
    forward = make_actor_critic_forward(params)   # weight fusion hoisted here

    # --- small check: B=8 (single grid step path) ---
    B = 8
    x = jax.random.normal(k_x, (B, STATE_DIM), jnp.float32)
    probs, value = forward(x)
    jax.block_until_ready((probs, value))

    ref_probs, ref_value = reference_forward(x, params)
    assert probs.shape == (B, ACTION_DIM) and value.shape == (B, 1)
    assert jnp.allclose(probs, ref_probs, atol=1e-4, rtol=0)
    assert jnp.allclose(value, ref_value, atol=1e-4, rtol=1e-4)
    assert jnp.allclose(jnp.sum(probs, axis=-1), 1.0, atol=1e-5)

    # --- larger check: non-multiple batch -> padding + >=2-step grid path ---
    B2 = 600
    x2 = jax.random.normal(k_x2, (B2, STATE_DIM), jnp.float32)
    probs2, value2 = forward(x2)
    jax.block_until_ready((probs2, value2))

    ref_probs2, ref_value2 = reference_forward(x2, params)
    assert probs2.shape == (B2, ACTION_DIM) and value2.shape == (B2, 1)
    assert jnp.allclose(probs2, ref_probs2, atol=1e-4, rtol=0)
    assert jnp.allclose(value2, ref_value2, atol=1e-4, rtol=1e-4)
    assert jnp.allclose(jnp.sum(probs2, axis=-1), 1.0, atol=1e-5)

    print("KERNEL_OK")
</pallas_src>

<mosaic_0001>
module attributes {stable_mosaic.version = 11 : i64} {
  func.func @actor_critic_kernel(%arg0: i32, %arg1: memref<4x128xf32, #tpu.memory_space<vmem>>, %arg2: memref<256x4xf32, #tpu.memory_space<vmem>>, %arg3: memref<256x1xf32, #tpu.memory_space<vmem>>, %arg4: memref<8x256xf32, #tpu.memory_space<vmem>>, %arg5: memref<8x1xf32, #tpu.memory_space<vmem>>, %arg6: memref<8x128xf32, #tpu.memory_space<vmem>>) attributes {dimension_semantics = [#tpu.dimension_semantics<parallel>], iteration_bounds = array<i64: 1>, scalar_prefetch = 0 : i64, scratch_operands = 0 : i64, tpu.core_type = #tpu.core_type<tc>, window_params = [{transform_indices = @transform_0, window_bounds = array<i64: 4, 128>}, {pipeline_mode = #tpu.pipeline_mode<synchronous>, transform_indices = @transform_1, window_bounds = array<i64: 256, 4>}, {pipeline_mode = #tpu.pipeline_mode<synchronous>, transform_indices = @transform_2, window_bounds = array<i64: 256, 1>}, {pipeline_mode = #tpu.pipeline_mode<synchronous>, transform_indices = @transform_3, window_bounds = array<i64: 8, 256>}, {pipeline_mode = #tpu.pipeline_mode<synchronous>, transform_indices = @transform_4, window_bounds = array<i64: 8, 1>}, {transform_indices = @transform_5, window_bounds = array<i64: 8, 128>}]} {
    %c0 = arith.constant 0 : index
    %c0_0 = arith.constant 0 : index
    %0 = vector.load %arg1[%c0, %c0_0] : memref<4x128xf32, #tpu.memory_space<vmem>>, vector<4x128xf32>
    %c0_1 = arith.constant 0 : index
    %c0_2 = arith.constant 0 : index
    %1 = vector.load %arg2[%c0_1, %c0_2] : memref<256x4xf32, #tpu.memory_space<vmem>>, vector<256x4xf32>
    %c0_3 = arith.constant 0 : index
    %c0_4 = arith.constant 0 : index
    %2 = vector.load %arg3[%c0_3, %c0_4] : memref<256x1xf32, #tpu.memory_space<vmem>>, vector<256x1xf32>
    %3 = vector.extract_strided_slice %1 {offsets = [0, 0], sizes = [256, 1], strides = [1, 1]} : vector<256x4xf32> to vector<256x1xf32>
    %4 = vector.extract_strided_slice %0 {offsets = [0, 0], sizes = [1, 128], strides = [1, 1]} : vector<4x128xf32> to vector<1x128xf32>
    %5 = vector.broadcast %3 : vector<256x1xf32> to vector<256x128xf32>
    %6 = vector.broadcast %4 : vector<1x128xf32> to vector<256x128xf32>
    %7 = arith.mulf %5, %6 : vector<256x128xf32>
    %8 = vector.broadcast %2 : vector<256x1xf32> to vector<256x128xf32>
    %9 = arith.addf %7, %8 : vector<256x128xf32>
    %10 = vector.extract_strided_slice %1 {offsets = [0, 1], sizes = [256, 1], strides = [1, 1]} : vector<256x4xf32> to vector<256x1xf32>
    %11 = vector.extract_strided_slice %0 {offsets = [1, 0], sizes = [1, 128], strides = [1, 1]} : vector<4x128xf32> to vector<1x128xf32>
    %12 = vector.broadcast %10 : vector<256x1xf32> to vector<256x128xf32>
    %13 = vector.broadcast %11 : vector<1x128xf32> to vector<256x128xf32>
    %14 = arith.mulf %12, %13 : vector<256x128xf32>
    %15 = arith.addf %9, %14 : vector<256x128xf32>
    %16 = vector.extract_strided_slice %1 {offsets = [0, 2], sizes = [256, 1], strides = [1, 1]} : vector<256x4xf32> to vector<256x1xf32>
    %17 = vector.extract_strided_slice %0 {offsets = [2, 0], sizes = [1, 128], strides = [1, 1]} : vector<4x128xf32> to vector<1x128xf32>
    %18 = vector.broadcast %16 : vector<256x1xf32> to vector<256x128xf32>
    %19 = vector.broadcast %17 : vector<1x128xf32> to vector<256x128xf32>
    %20 = arith.mulf %18, %19 : vector<256x128xf32>
    %21 = arith.addf %15, %20 : vector<256x128xf32>
    %22 = vector.extract_strided_slice %1 {offsets = [0, 3], sizes = [256, 1], strides = [1, 1]} : vector<256x4xf32> to vector<256x1xf32>
    %23 = vector.extract_strided_slice %0 {offsets = [3, 0], sizes = [1, 128], strides = [1, 1]} : vector<4x128xf32> to vector<1x128xf32>
    %24 = vector.broadcast %22 : vector<256x1xf32> to vector<256x128xf32>
    %25 = vector.broadcast %23 : vector<1x128xf32> to vector<256x128xf32>
    %26 = arith.mulf %24, %25 : vector<256x128xf32>
    %27 = arith.addf %21, %26 : vector<256x128xf32>
    %cst = arith.constant 0.000000e+00 : f32
    %28 = vector.broadcast %cst : f32 to vector<256x128xf32>
    %29 = arith.maximumf %27, %28 : vector<256x128xf32>
    %c0_5 = arith.constant 0 : index
    %c0_6 = arith.constant 0 : index
    %30 = vector.load %arg4[%c0_5, %c0_6] : memref<8x256xf32, #tpu.memory_space<vmem>>, vector<8x256xf32>
    %cst_7 = arith.constant dense<0.000000e+00> : vector<8x128xf32>
    %31 = tpu.matmul %30, %29, %cst_7 {dimension_numbers = #tpu.dot_dimension_numbers<[1], [0], [0], [1], [0, 0, 1, 1], [], []>} : vector<8x256xf32>, vector<256x128xf32>, vector<8x128xf32> -> vector<8x128xf32>
    %c0_8 = arith.constant 0 : index
    %c0_9 = arith.constant 0 : index
    %32 = vector.load %arg5[%c0_8, %c0_9] : memref<8x1xf32, #tpu.memory_space<vmem>>, vector<8x1xf32>
    %33 = vector.broadcast %32 : vector<8x1xf32> to vector<8x128xf32>
    %34 = arith.addf %31, %33 : vector<8x128xf32>
    %35 = vector.extract_strided_slice %34 {offsets = [0, 0], sizes = [1, 128], strides = [1, 1]} : vector<8x128xf32> to vector<1x128xf32>
    %36 = vector.extract_strided_slice %34 {offsets = [1, 0], sizes = [1, 128], strides = [1, 1]} : vector<8x128xf32> to vector<1x128xf32>
    %37 = arith.maximumf %35, %36 : vector<1x128xf32>
    %38 = arith.subf %35, %37 : vector<1x128xf32>
    %39 = math.exp %38 : vector<1x128xf32>
    %40 = arith.subf %36, %37 : vector<1x128xf32>
    %41 = math.exp %40 : vector<1x128xf32>
    %42 = arith.addf %39, %41 : vector<1x128xf32>
    %43 = tpu.reciprocal %42 : vector<1x128xf32> -> vector<1x128xf32>
    %c0_10 = arith.constant 0 : index
    %c0_11 = arith.constant 0 : index
    %44 = vector.load %arg6[%c0_10, %c0_11] : memref<8x128xf32, #tpu.memory_space<vmem>>, vector<8x128xf32>
    tpu.vector_store %arg6[%c0_10, %c0_11], %34 {strides = array<i32>} : memref<8x128xf32, #tpu.memory_space<vmem>>, vector<8x128xf32>,
    %45 = arith.mulf %39, %43 : vector<1x128xf32>
    %c0_12 = arith.constant 0 : index
    %c0_13 = arith.constant 0 : index
    %46 = vector.load %arg6[%c0_12, %c0_13] : memref<8x128xf32, #tpu.memory_space<vmem>>, vector<1x128xf32>
    tpu.vector_store %arg6[%c0_12, %c0_13], %45 {strides = array<i32>} : memref<8x128xf32, #tpu.memory_space<vmem>>, vector<1x128xf32>,
    %47 = arith.mulf %41, %43 : vector<1x128xf32>
    %c1 = arith.constant 1 : index
    %c0_14 = arith.constant 0 : index
    %48 = vector.load %arg6[%c1, %c0_14] : memref<8x128xf32, #tpu.memory_space<vmem>>, vector<1x128xf32>
    tpu.vector_store %arg6[%c1, %c0_14], %47 {strides = array<i32>} : memref<8x128xf32, #tpu.memory_space<vmem>>, vector<1x128xf32>,
    return
  }
  func.func @transform_0(%arg0: i32) -> (i32, i32) {
    %c0_i32 = arith.constant 0 : i32
    %c0_i32_0 = arith.constant 0 : i32
    return %c0_i32, %arg0 : i32, i32
  }
  func.func @transform_1(%arg0: i32) -> (i32, i32) {
    %c0_i32 = arith.constant 0 : i32
    %c0_i32_0 = arith.constant 0 : i32
    %c0_i32_1 = arith.constant 0 : i32
    return %c0_i32, %c0_i32_0 : i32, i32
  }
  func.func @transform_2(%arg0: i32) -> (i32, i32) {
    %c0_i32 = arith.constant 0 : i32
    %c0_i32_0 = arith.constant 0 : i32
    %c0_i32_1 = arith.constant 0 : i32
    return %c0_i32, %c0_i32_0 : i32, i32
  }
  func.func @transform_3(%arg0: i32) -> (i32, i32) {
    %c0_i32 = arith.constant 0 : i32
    %c0_i32_0 = arith.constant 0 : i32
    %c0_i32_1 = arith.constant 0 : i32
    return %c0_i32, %c0_i32_0 : i32, i32
  }
  func.func @transform_4(%arg0: i32) -> (i32, i32) {
    %c0_i32 = arith.constant 0 : i32
    %c0_i32_0 = arith.constant 0 : i32
    %c0_i32_1 = arith.constant 0 : i32
    return %c0_i32, %c0_i32_0 : i32, i32
  }
  func.func @transform_5(%arg0: i32) -> (i32, i32) {
    %c0_i32 = arith.constant 0 : i32
    %c0_i32_0 = arith.constant 0 : i32
    return %c0_i32, %arg0 : i32, i32
  }
}

</mosaic_0001>

<bundles_post_ra>
// kernel: forward.1
= control target key start
LH: loop header
LB: loop body
LE: loop exit
PB: predicated region body
PF: predicated region fallthrough
CT: control target
= control target key end

     0   :  { %10 = vsyncpa [#allocation3], 0  ;;  %s2124_s0 = inlined_call_operand.vmem [shape: f32[4,128], index: 0, kind: input, shape index: {}]   ;;  %s2125_s1 = inlined_call_operand.hbm [shape: f32[256,4], index: 1, kind: input, shape index: {}]   ;;  %s2126_s2 = inlined_call_operand.hbm [shape: f32[256,1], index: 2, kind: input, shape index: {}]   ;;  %s2127_s3 = inlined_call_operand.vmem [shape: f32[8,256], index: 3, kind: input, shape index: {}]   ;;  %s2128_s4 = inlined_call_operand.hbm [shape: f32[8,1], index: 4, kind: input, shape index: {}]   ;;  %s2129_s5 = inlined_call_operand.vmem [shape: f32[8,128], index: 5, kind: output, shape index: {}]  }
   0x1   :  { %11 = vsyncpa [#allocation5], 0  ;;  %s1407_s18 = smov [#allocation4]   ;;  %s1408_s20 = smov [#allocation2]  }
   0x2   :  { %s31_s19 = sshll.u32 %s1407_s18, 4  ;;  %s19_s21 = sshll.u32 %s1408_s20, 4  ;;  %s32_s19 = int_to_ptr.vmem [resolvable:$true] %s31_s19  ;;  %s20_s21 = int_to_ptr.vmem [resolvable:$true] %s19_s21 }
   0x3   :  { %s1351_s22 = scalar_lea.vmem %s32_s19, 4096  ;;  %p1356_p1 = scmp.lt.s32.totalorder %s32_s19, %s32_s19 }
   0x4   :  { %p1352_p0 = scmp.ne.s32.totalorder %s32_s19, %s1351_s22  ;;  %p1357_p2 = scmp.lt.s32.totalorder %s1351_s22, %s1351_s22 }
   0x6   :  { %p1358_p3 = por %p1357_p2, %p1356_p1 }
   0x8   :  { %p1359_p4 = pnand %p1358_p3, %p1352_p0 }
   0xa   :  { %1362 = shalt.err (!%p1359_p4)
}
   0xb   :  { %s1409_s23 = smov 128   ;;  %s1410_s24 = smov 8  }
   0xc   :  { %37 = dma.hbm_to_vmem [thread:$0]  %s2126_s2, 4096, %s32_s19, [#allocation5], %s1409_s23, %s1409_s23, %s1410_s24  }
   0xd   :  { %s1371_s27 = scalar_lea.vmem %s20_s21, 4096  ;;  %p1376_p6 = scmp.lt.s32.totalorder %s20_s21, %s20_s21 }
   0xe   :  { %p1372_p5 = scmp.ne.s32.totalorder %s20_s21, %s1371_s27  ;;  %p1377_p7 = scmp.lt.s32.totalorder %s1371_s27, %s1371_s27 }
  0x10   :  { %p1378_p8 = por %p1377_p7, %p1376_p6 }
  0x12   :  { %p1379_p9 = pnand %p1378_p8, %p1372_p5 }
  0x14   :  { %1382 = shalt.err (!%p1379_p9)
}
  0x15   :  { %25 = dma.hbm_to_vmem [thread:$0]  %s2125_s1, 4096, %s20_s21, [#allocation3], %s1409_s23, %s1409_s23, %s1410_s24  }
  0x16   :  { %s1411_s30 = smov [#allocation6]  }
  0x17   :  { %s46_s6 = sshll.u32 %s1411_s30, 4  ;;  %s47_s6 = int_to_ptr.vmem [resolvable:$true] %s46_s6 }
  0x18   :  { %s1391_s7 = scalar_lea.vmem %s47_s6, 128  ;;  %p1396_p11 = scmp.lt.s32.totalorder %s47_s6, %s47_s6 }
  0x19   :  { %p1392_p10 = scmp.ne.s32.totalorder %s47_s6, %s1391_s7  ;;  %p1397_p12 = scmp.lt.s32.totalorder %s1391_s7, %s1391_s7 }
  0x1b   :  { %p1398_p13 = por %p1397_p12, %p1396_p11 }
  0x1d   :  { %p1399_p0 = pnand %p1398_p13, %p1392_p10 }
  0x1f   :  { %1402 = shalt.err (!%p1399_p0)
}
  0x20   :  { %49 = dma.hbm_to_vmem [thread:$0]  %s2128_s4, 128, %s47_s6, [#allocation5]  }
  0x21   :  { %1403 = dma.done.wait [#allocation3], 4096  }
  0x22   :  { %1404 = vsyncadd [#allocation3], 4294963200 }
  0x23   :  { %1405 = dma.done.wait [#allocation5], 4224  }
  0x24   :  { %1406 = vsyncadd [#allocation5], 4294963072  ;;  %v2130_v0 = vmov 0   ;;  %v1457_v1 = vld [vmem:[#allocation2 + $0x10] sm:$0xff]  ;;  %v1459_v2 = vld [vmem:[#allocation2] sm:$0xff] }
  0x25   :  { %1287 = vset.pattern.permute.xlu1 %v2130_v0  ;;  %1286 = vset.pattern.permute.xlu0 %v2130_v0  ;;  %v1463_v3 = vld [vmem:[#allocation2 + $0x18] sm:$0xff]  ;;  %v1465_v4 = vld [vmem:[#allocation2 + $0x8] sm:$0xff]  ;;  %v1471_v6 = vld [vmem:[#allocation2 + $0x20] sm:$0xff] }
  0x26   :  { %136 = vperm.xlu1 %1287, %v1457_v1   ;;  %126 = vperm.xlu0 %1286, %v1459_v2   ;;  %v1469_v5 = vld [vmem:[#allocation2 + $0x28] sm:$0xff]  ;;  %v1475_v7 = vld [vmem:[#allocation2 + $0x38] sm:$0xff]  ;;  %v1477_v8 = vld [vmem:[#allocation2 + $0x30] sm:$0xff] }
  0x27   :  { %v1481_v9 = vld [vmem:[#allocation2 + $0x48] sm:$0xff]  ;;  %v1483_v10 = vld [vmem:[#allocation2 + $0x40] sm:$0xff]  ;;  %v1487_v11 = vld [vmem:[#allocation2 + $0x58] sm:$0xff] }
  0x28   :  { %v1489_v12 = vld [vmem:[#allocation2 + $0x50] sm:$0xff]  ;;  %v1493_v13 = vld [vmem:[#allocation2 + $0x68] sm:$0xff]  ;;  %v1495_v14 = vld [vmem:[#allocation2 + $0x60] sm:$0xff] }
  0x29   :  { %v1499_v15 = vld [vmem:[#allocation2 + $0x78] sm:$0xff]  ;;  %v1501_v16 = vld [vmem:[#allocation2 + $0x70] sm:$0xff]  ;;  %v1505_v17 = vld [vmem:[#allocation2 + $0x88] sm:$0xff] }
  0x2a   :  { %141 = vperm.xlu1 %1287, %v1463_v3   ;;  %131 = vperm.xlu0 %1286, %v1465_v4   ;;  %v1507_v18 = vld [vmem:[#allocation2 + $0x80] sm:$0xff]  ;;  %v1511_v19 = vld [vmem:[#allocation2 + $0x98] sm:$0xff]  ;;  %v1513_v20 = vld [vmem:[#allocation2 + $0x90] sm:$0xff] }
  0x2b   :  { %2139 = vst [vmem:[#allocation9_spill] sm:$0xff] %v1507_v18  ;;  %v1517_v21 = vld [vmem:[#allocation2 + $0xa8] sm:$0xff]  ;;  %v1519_v22 = vld [vmem:[#allocation2 + $0xa0] sm:$0xff]  ;;  %v1523_v23 = vld [vmem:[#allocation2 + $0xb8] sm:$0xff] }
  0x2c   :  { %v1525_v24 = vld [vmem:[#allocation2 + $0xb0] sm:$0xff]  ;;  %v1529_v25 = vld [vmem:[#allocation2 + $0xc8] sm:$0xff]  ;;  %v1531_v26 = vld [vmem:[#allocation2 + $0xc0] sm:$0xff] }
  0x2d   :  { %v1535_v27 = vld [vmem:[#allocation2 + $0xd8] sm:$0xff]  ;;  %v1537_v28 = vld [vmem:[#allocation2 + $0xd0] sm:$0xff]  ;;  %v1541_v29 = vld [vmem:[#allocation2 + $0xe8] sm:$0xff] }
  0x2e   :  { %151 = vperm.xlu1 %1287, %v1469_v5   ;;  %146 = vperm.xlu0 %1286, %v1471_v6   ;;  %v1543_v30 = vld [vmem:[#allocation2 + $0xe0] sm:$0xff]  ;;  %v1547_v31 = vld [vmem:[#allocation2 + $0xf8] sm:$0xff]  ;;  %v1549_v32 = vld [vmem:[#allocation2 + $0xf0] sm:$0xff] }
  0x2f   :  { %v93_v33 = vld [vmem:[#allocation4 + $0x8] sm:$0xff]  ;;  %v92_v34 = vld [vmem:[#allocation4] sm:$0xff]  ;;  %v95_v35 = vld [vmem:[#allocation4 + $0x18] sm:$0xff] }
  0x30   :  { %v94_v36 = vld [vmem:[#allocation4 + $0x10] sm:$0xff]  ;;  %v97_v37 = vld [vmem:[#allocation4 + $0x28] sm:$0xff]  ;;  %v96_v38 = vld [vmem:[#allocation4 + $0x20] sm:$0xff] }
  0x31   :  { %v99_v39 = vld [vmem:[#allocation4 + $0x38] sm:$0xff]  ;;  %v98_v40 = vld [vmem:[#allocation4 + $0x30] sm:$0xff]  ;;  %v101_v41 = vld [vmem:[#allocation4 + $0x48] sm:$0xff] }
  0x32   :  { %161 = vperm.xlu1 %1287, %v1475_v7   ;;  %156 = vperm.xlu0 %1286, %v1477_v8   ;;  %v100_v42 = vld [vmem:[#allocation4 + $0x40] sm:$0xff]  ;;  %v103_v43 = vld [vmem:[#allocation4 + $0x58] sm:$0xff]  ;;  %v102_v44 = vld [vmem:[#allocation4 + $0x50] sm:$0xff] }
  0x33   :  { %v105_v45 = vld [vmem:[#allocation4 + $0x68] sm:$0xff]  ;;  %v104_v46 = vld [vmem:[#allocation4 + $0x60] sm:$0xff]  ;;  %v107_v47 = vld [vmem:[#allocation4 + $0x78] sm:$0xff] }
  0x34   :  { %v106_v48 = vld [vmem:[#allocation4 + $0x70] sm:$0xff]  ;;  %v109_v49 = vld [vmem:[#allocation4 + $0x88] sm:$0xff]  ;;  %v108_v50 = vld [vmem:[#allocation4 + $0x80] sm:$0xff] }
  0x35   :  { %v111_v51 = vld [vmem:[#allocation4 + $0x98] sm:$0xff]  ;;  %v110_v52 = vld [vmem:[#allocation4 + $0x90] sm:$0xff]  ;;  %v113_v53 = vld [vmem:[#allocation4 + $0xa8] sm:$0xff] }
  0x36   :  { %171 = vperm.xlu1 %1287, %v1481_v9   ;;  %166 = vperm.xlu0 %1286, %v1483_v10   ;;  %v112_v54 = vld [vmem:[#allocation4 + $0xa0] sm:$0xff]  ;;  %v115_v55 = vld [vmem:[#allocation4 + $0xb8] sm:$0xff]  ;;  %v114_v56 = vld [vmem:[#allocation4 + $0xb0] sm:$0xff] }
  0x37   :  { %v117_v57 = vld [vmem:[#allocation4 + $0xc8] sm:$0xff]  ;;  %v116_v58 = vld [vmem:[#allocation4 + $0xc0] sm:$0xff]  ;;  %v119_v59 = vld [vmem:[#allocation4 + $0xd8] sm:$0xff] }
  0x38   :  { %v118_v60 = vld [vmem:[#allocation4 + $0xd0] sm:$0xff]  ;;  %v121_v61 = vld [vmem:[#allocation4 + $0xe8] sm:$0xff]  ;;  %v120_v62 = vld [vmem:[#allocation4 + $0xe0] sm:$0xff] }
  0x39   :  { %v123_v63 = vld [vmem:[#allocation4 + $0xf8] sm:$0xff] }
  0x3a   :  { %181 = vperm.xlu1 %1287, %v1487_v11   ;;  %176 = vperm.xlu0 %1286, %v1489_v12  }
  0x3e   :  { %191 = vperm.xlu1 %1287, %v1493_v13   ;;  %186 = vperm.xlu0 %1286, %v1495_v14  }
  0x42   :  { %201 = vperm.xlu1 %1287, %v1499_v15   ;;  %196 = vperm.xlu0 %1286, %v1501_v16  }
  0x46   :  { %211 = vperm.xlu1 %1287, %v1505_v17   ;;  %206 = vperm.xlu0 %1286, %v1507_v18  }
  0x4a   :  { %221 = vperm.xlu1 %1287, %v1511_v19   ;;  %216 = vperm.xlu0 %1286, %v1513_v20  }
  0x4e   :  { %231 = vperm.xlu1 %1287, %v1517_v21   ;;  %226 = vperm.xlu0 %1286, %v1519_v22  }
  0x52   :  { %241 = vperm.xlu1 %1287, %v1523_v23   ;;  %236 = vperm.xlu0 %1286, %v1525_v24  }
  0x56   :  { %251 = vperm.xlu1 %1287, %v1529_v25   ;;  %246 = vperm.xlu0 %1286, %v1531_v26  }
  0x5a   :  { %261 = vperm.xlu1 %1287, %v1535_v27   ;;  %256 = vperm.xlu0 %1286, %v1537_v28  }
  0x5e   :  { %271 = vperm.xlu1 %1287, %v1541_v29   ;;  %266 = vperm.xlu0 %1286, %v1543_v30  }
  0x62   :  { %281 = vperm.xlu1 %1287, %v1547_v31   ;;  %276 = vperm.xlu0 %1286, %v1549_v32  }
  0x66   :  { %327 = vperm.xlu1 %1287, %v93_v33   ;;  %322 = vperm.xlu0 %1286, %v92_v34   ;;  %v122_v33 = vld [vmem:[#allocation4 + $0xf0] sm:$0xff] }
  0x6a   :  { %337 = vperm.xlu1 %1287, %v95_v35   ;;  %332 = vperm.xlu0 %1286, %v94_v36  }
  0x6e   :  { %347 = vperm.xlu1 %1287, %v97_v37   ;;  %342 = vperm.xlu0 %1286, %v96_v38   ;;  %v2136_v38 = vmov 1  }
  0x72   :  { %357 = vperm.xlu1 %1287, %v99_v39   ;;  %352 = vperm.xlu0 %1286, %v98_v40  }
  0x76   :  { %367 = vperm.xlu1 %1287, %v101_v41   ;;  %362 = vperm.xlu0 %1286, %v100_v42  }
  0x7a   :  { %377 = vperm.xlu1 %1287, %v103_v43   ;;  %372 = vperm.xlu0 %1286, %v102_v44  }
  0x7e   :  { %387 = vperm.xlu1 %1287, %v105_v45   ;;  %382 = vperm.xlu0 %1286, %v104_v46  }
  0x82   :  { %397 = vperm.xlu1 %1287, %v107_v47   ;;  %392 = vperm.xlu0 %1286, %v106_v48  }
  0x86   :  { %407 = vperm.xlu1 %1287, %v109_v49   ;;  %402 = vperm.xlu0 %1286, %v108_v50  }
  0x8a   :  { %417 = vperm.xlu1 %1287, %v111_v51   ;;  %412 = vperm.xlu0 %1286, %v110_v52  }
  0x8e   :  { %427 = vperm.xlu1 %1287, %v113_v53   ;;  %422 = vperm.xlu0 %1286, %v112_v54  }
  0x92   :  { %437 = vperm.xlu1 %1287, %v115_v55   ;;  %432 = vperm.xlu0 %1286, %v114_v56   ;;  %v2134_v55 = vmov 2  }
  0x96   :  { %447 = vperm.xlu1 %1287, %v117_v57   ;;  %442 = vperm.xlu0 %1286, %v116_v58  }
  0x9a   :  { %457 = vperm.xlu1 %1287, %v119_v59   ;;  %452 = vperm.xlu0 %1286, %v118_v60   ;;  %v2132_v60 = vmov 3  }
  0x9e   :  { %467 = vperm.xlu1 %1287, %v121_v61   ;;  %462 = vperm.xlu0 %1286, %v120_v62  }
  0xa1   :  { %v1553_v34 = vpop.permute.xlu1 %136  ;;  %v1555_v35 = vpop.permute.xlu0 %126 }
  0xa2   :  { %2140 = vst [vmem:[#allocation10_spill] sm:$0xff] %v1553_v34  ;;  %477 = vperm.xlu1 %1287, %v123_v63   ;;  %472 = vperm.xlu0 %1286, %v122_v33  }
  0xa5   :  { %v1557_v36 = vpop.permute.xlu1 %141  ;;  %v1559_v37 = vpop.permute.xlu0 %131 }
  0xa6   :  { %2141 = vst [vmem:[#allocation11_spill] sm:$0xff] %v1559_v37  ;;  %1289 = vset.pattern.permute.xlu1 %v2136_v38  ;;  %1288 = vset.pattern.permute.xlu0 %v2136_v38 }
  0xa7   :  { %517 = vperm.xlu1 %1289, %v1465_v4   ;;  %513 = vperm.xlu0 %1288, %v1459_v2  }
  0xa9   :  { %v1565_v39 = vpop.permute.xlu1 %151  ;;  %v1567_v40 = vpop.permute.xlu0 %146 }
  0xaa   :  { %2142 = vst [vmem:[#allocation12_spill] sm:$0xff] %v1567_v40 }
  0xab   :  { %521 = vperm.xlu1 %1289, %v1457_v1   ;;  %525 = vperm.xlu0 %1288, %v1463_v3  }
  0xad   :  { %v1571_v41 = vpop.permute.xlu1 %161  ;;  %v1573_v42 = vpop.permute.xlu0 %156 }
  0xae   :  { %2143 = vst [vmem:[#allocation13_spill] sm:$0xff] %v1573_v42 }
  0xaf   :  { %529 = vperm.xlu1 %1289, %v1471_v6   ;;  %533 = vperm.xlu0 %1288, %v1469_v5  }
  0xb1   :  { %v1577_v43 = vpop.permute.xlu1 %171  ;;  %v1579_v44 = vpop.permute.xlu0 %166 }
  0xb2   :  { %2144 = vst [vmem:[#allocation14_spill] sm:$0xff] %v1579_v44 }
  0xb3   :  { %537 = vperm.xlu1 %1289, %v1477_v8   ;;  %541 = vperm.xlu0 %1288, %v1475_v7  }
  0xb5   :  { %v1583_v45 = vpop.permute.xlu1 %181  ;;  %v1585_v46 = vpop.permute.xlu0 %176 }
  0xb6   :  { %2145 = vst [vmem:[#allocation15_spill] sm:$0xff] %v1585_v46  ;;  %v2160_v46 = vmov 2  }
  0xb7   :  { %545 = vperm.xlu1 %1289, %v1483_v10   ;;  %549 = vperm.xlu0 %1288, %v1481_v9  }
  0xb9   :  { %v1589_v47 = vpop.permute.xlu1 %191  ;;  %v1591_v48 = vpop.permute.xlu0 %186 }
  0xbb   :  { %637 = vperm.xlu1 %1289, %v1547_v31   ;;  %573 = vperm.xlu0 %1288, %v1499_v15  }
  0xbd   :  { %v1595_v49 = vpop.permute.xlu1 %201  ;;  %v1597_v50 = vpop.permute.xlu0 %196 }
  0xbf   :  { %633 = vperm.xlu1 %1289, %v1549_v32   ;;  %629 = vperm.xlu0 %1288, %v1541_v29  }
  0xc1   :  { %v1601_v51 = vpop.permute.xlu1 %211  ;;  %v1603_v52 = vpop.permute.xlu0 %206 }
  0xc2   :  { %2146 = vst [vmem:[#allocation16_spill] sm:$0xff] %v1601_v51 }
  0xc3   :  { %569 = vperm.xlu1 %1289, %v1501_v16   ;;  %565 = vperm.xlu0 %1288, %v1493_v13  }
  0xc5   :  { %v1607_v53 = vpop.permute.xlu1 %221  ;;  %v1609_v54 = vpop.permute.xlu0 %216 }
  0xc6   :  { %2147 = vst [vmem:[#allocation17_spill] sm:$0xff] %v1607_v53 }
  0xc7   :  { %1290 = vset.pattern.permute.xlu1 %v2134_v55  ;;  %557 = vperm.xlu0 %1288, %v1487_v11  }
  0xc8   :  { %769 = vperm.xlu1 %1290, %v1499_v15  }
  0xc9   :  { %v1614_v56 = vpop.permute.xlu1 %231  ;;  %v1616_v57 = vpop.permute.xlu0 %226 }
  0xca   :  { %2148 = vst [vmem:[#allocation18_spill] sm:$0xff] %v1614_v56  ;;  %v2154_v56 = vmov 3  }
  0xcb   :  { %617 = vperm.xlu0 %1288, %v1537_v28  }
  0xcc   :  { %829 = vperm.xlu1 %1290, %v1549_v32  }
  0xcd   :  { %v1620_v58 = vpop.permute.xlu1 %241  ;;  %v1622_v59 = vpop.permute.xlu0 %236 }
  0xce   :  { %2149 = vst [vmem:[#allocation19_spill] sm:$0xff] %v1620_v58  ;;  %v2157_v58 = vmov 1  }
  0xcf   :  { %1301 = vset.pattern.permute.xlu0 %v2134_v55 }
  0xd0   :  { %1291 = vset.pattern.permute.xlu1 %v2132_v60  ;;  %833 = vperm.xlu0 %1301, %v1547_v31  }
  0xd1   :  { %v1627_v61 = vpop.permute.xlu1 %251  ;;  %1029 = vperm.xlu1 %1291, %v1547_v31   ;;  %v1630_v62 = vpop.permute.xlu0 %246 }
  0xd2   :  { %2150 = vst [vmem:[#allocation20_spill] sm:$0xff] %v1627_v61 }
  0xd4   :  { %761 = vperm.xlu0 %1301, %v1493_v13  }
  0xd5   :  { %v1633_v63 = vpop.permute.xlu1 %261  ;;  %1292 = vset.pattern.permute.xlu1 %v2134_v55  ;;  %v1636_v33 = vpop.permute.xlu0 %256 }
  0xd6   :  { %2151 = vst [vmem:[#allocation21_spill] sm:$0xff] %v1633_v63  ;;  %765 = vperm.xlu1 %1292, %v1501_v16  }
  0xd8   :  { %821 = vperm.xlu0 %1301, %v1543_v30  }
  0xd9   :  { %v1640_v0 = vpop.permute.xlu1 %271  ;;  %v1642_v60 = vpop.permute.xlu0 %266 }
  0xda   :  { %1293 = vset.pattern.permute.xlu1 %v2136_v38 }
  0xdb   :  { %625 = vperm.xlu1 %1293, %v1543_v30  }
  0xdc   :  { %813 = vperm.xlu0 %1301, %v1537_v28  }
  0xdd   :  { %v1647_v31 = vpop.permute.xlu1 %281  ;;  %v1649_v37 = vpop.permute.xlu0 %276 }
  0xdf   :  { %1294 = vset.pattern.permute.xlu1 %v2134_v55 }
  0xe0   :  { %825 = vperm.xlu1 %1294, %v1541_v29   ;;  %805 = vperm.xlu0 %1301, %v1531_v26  }
  0xe1   :  { %v1654_v51 = vpop.permute.xlu1 %327  ;;  %v1656_v34 = vpop.permute.xlu0 %322 }
  0xe2   :  { %2152 = vst [vmem:[#allocation22_spill] sm:$0xff] %v1654_v51 }
  0xe4   :  { %1295 = vset.pattern.permute.xlu1 %v2136_v38  ;;  %797 = vperm.xlu0 %1301, %v1525_v24  }
  0xe5   :  { %v1660_v53 = vpop.permute.xlu1 %337  ;;  %561 = vperm.xlu1 %1295, %v1495_v14   ;;  %v1663_v40 = vpop.permute.xlu0 %332 }
  0xe6   :  { %2153 = vst [vmem:[#allocation23_spill] sm:$0xff] %v1663_v40  ;;  %v284_v40 = vlaneseq }
  0xe8   :  { %789 = vperm.xlu0 %1301, %v1519_v22  }
  0xe9   :  { %v1666_v55 = vpop.permute.xlu1 %347  ;;  %1296 = vset.pattern.permute.xlu1 %v2154_v56  ;;  %v1669_v42 = vpop.permute.xlu0 %342 }
  0xea   :  { %2155 = vst [vmem:[#allocation24_spill] sm:$0xff] %v1669_v42  ;;  %961 = vperm.xlu1 %1296, %v1501_v16   ;;  %v1686_v16 = vshrl.u32 %v284_v40, 7 }
  0xec   :  { %781 = vperm.xlu0 %1301, %v1513_v20   ;;  %v286_v18 = vsub.s32 0, %v1686_v16 }
  0xed   :  { %v1673_v38 = vpop.permute.xlu1 %357  ;;  %v1675_v51 = vpop.permute.xlu0 %352 }
  0xee   :  { %2156 = vst [vmem:[#allocation25_spill] sm:$0xff] %v1675_v51  ;;  %1297 = vset.pattern.permute.xlu1 %v2157_v58 }
  0xef   :  { %621 = vperm.xlu1 %1297, %v1535_v27  }
  0xf0   :  { %1326 = vset.pattern.permute.xlu0 %v2154_v56 }
  0xf1   :  { %v1680_v44 = vpop.permute.xlu1 %367  ;;  %965 = vperm.xlu0 %1326, %v1499_v15   ;;  %v1683_v42 = vpop.permute.xlu0 %362  ;;  %v1699_v15 = vld [vmem:[%s2124_s0] sm:$0xf] }
  0xf2   :  { %2158 = vst [vmem:[#allocation26_spill] sm:$0xff] %v1683_v42 }
  0xf3   :  { %1298 = vset.pattern.permute.xlu1 %v2154_v56 }
  0xf4   :  { %1021 = vperm.xlu1 %1298, %v1541_v29  }
  0xf5   :  { %v1689_v51 = vpop.permute.xlu1 %377  ;;  %1025 = vperm.xlu0 %1326, %v1549_v32   ;;  %v1692_v61 = vpop.permute.xlu0 %372  ;;  %v1708_v32 = vrot.slane %v1699_v15, %v286_v18 }
  0xf6   :  { %2159 = vst [vmem:[#allocation27_spill] sm:$0xff] %v1692_v61 }
  0xf7   :  { %v304_v63 = vmul.f32 %v1708_v32, %v1603_v52  ;;  %v306_v18 = vmul.f32 %v1708_v32, %v1609_v54 }
  0xf8   :  { %1299 = vset.pattern.permute.xlu1 %v2160_v46 }
  0xf9   :  { %v1701_v42 = vpop.permute.xlu1 %387  ;;  %757 = vperm.xlu1 %1299, %v1495_v14   ;;  %1017 = vperm.xlu0 %1326, %v1543_v30   ;;  %v1705_v29 = vpop.permute.xlu0 %382 }
  0xfa   :  { %2161 = vst [vmem:[#allocation28_spill] sm:$0xff] %v1701_v42  ;;  %2162 = vst [vmem:[#allocation29_spill] sm:$0xff] %v1705_v29 }
  0xfd   :  { %v1710_v40 = vpop.permute.xlu1 %397  ;;  %1300 = vset.pattern.permute.xlu1 %v2154_v56  ;;  %953 = vperm.xlu0 %1326, %v1495_v14   ;;  %v1714_v61 = vpop.permute.xlu0 %392 }
  0xfe   :  { %957 = vperm.xlu1 %1300, %v1493_v13   ;;  %v308_v13 = vmul.f32 %v1708_v32, %v1616_v57 }
 0x101   :  { %v1719_v42 = vpop.permute.xlu1 %407  ;;  %949 = vperm.xlu0 %1326, %v1487_v11   ;;  %v403_v30 = vpop.permute.xlu0 %402 }
 0x102   :  { %2163 = vst [vmem:[#allocation30_spill] sm:$0xff] %v1719_v42  ;;  %v1724_v29 = vadd.f32 %v403_v30, %v304_v63  ;;  %1302 = vset.pattern.permute.xlu1 %v2160_v46 }
 0x103   :  { %817 = vperm.xlu1 %1302, %v1535_v27  }
 0x104   :  { %2164 = vst [vmem:[#allocation31_spill] sm:$0xff] %v1724_v29 }
 0x105   :  { %v1728_v14 = vpop.permute.xlu1 %417  ;;  %1009 = vperm.xlu0 %1326, %v1537_v28   ;;  %v413_v52 = vpop.permute.xlu0 %412  ;;  %v310_v28 = vmul.f32 %v1708_v32, %v1622_v59 }
 0x106   :  { %2165 = vst [vmem:[#allocation32_spill] sm:$0xff] %v1728_v14  ;;  %v1733_v42 = vadd.f32 %v413_v52, %v306_v18  ;;  %v312_v52 = vmul.f32 %v1708_v32, %v1630_v62 }
 0x107   :  { %1303 = vset.pattern.permute.xlu1 %v2157_v58 }
 0x108   :  { %2166 = vst [vmem:[#allocation33_spill] sm:$0xff] %v1733_v42  ;;  %553 = vperm.xlu1 %1303, %v1489_v12  }
 0x109   :  { %v1737_v54 = vpop.permute.xlu1 %427  ;;  %v423_v63 = vpop.permute.xlu0 %422  ;;  %945 = vperm.xlu0 %1326, %v1489_v12  }
 0x10a   :  { %2167 = vst [vmem:[#allocation34_spill] sm:$0xff] %v1737_v54  ;;  %v1740_v30 = vadd.f32 %v423_v63, %v308_v13 }
 0x10c   :  { %2168 = vst [vmem:[#allocation35_spill] sm:$0xff] %v1740_v30  ;;  %1304 = vset.pattern.permute.xlu1 %v2160_v46 }
 0x10d   :  { %v1745_v29 = vpop.permute.xlu1 %437  ;;  %753 = vperm.xlu1 %1304, %v1487_v11   ;;  %v433_v57 = vpop.permute.xlu0 %432  ;;  %941 = vperm.xlu0 %1326, %v1481_v9   ;;  %v314_v11 = vmul.f32 %v1708_v32, %v1636_v33  ;;  %v642_v33 = vsub.s32 1, %v1686_v16 }
 0x10e   :  { %2169 = vst [vmem:[#allocation36_spill] sm:$0xff] %v1745_v29  ;;  %v1749_v18 = vadd.f32 %v433_v57, %v310_v28  ;;  %v291_v29 = vmul.f32 %v1708_v32, %v1557_v36 }
 0x111   :  { %v1753_v14 = vpop.permute.xlu1 %447  ;;  %1305 = vset.pattern.permute.xlu1 %v2157_v58  ;;  %v443_v13 = vpop.permute.xlu0 %442  ;;  %1001 = vperm.xlu0 %1326, %v1531_v26  }
 0x112   :  { %v1757_v59 = vadd.f32 %v443_v13, %v312_v52  ;;  %613 = vperm.xlu1 %1305, %v1529_v25  }
 0x115   :  { %v1762_v63 = vpop.permute.xlu1 %457  ;;  %v453_v28 = vpop.permute.xlu0 %452  ;;  %937 = vperm.xlu0 %1326, %v1483_v10  }
 0x116   :  { %v1765_v62 = vadd.f32 %v453_v28, %v314_v11  ;;  %1306 = vset.pattern.permute.xlu1 %v2154_v56  ;;  %v1785_v28 = vrot.slane %v1699_v15, %v642_v33 }
 0x117   :  { %1013 = vperm.xlu1 %1306, %v1535_v27   ;;  %v288_v27 = vmul.f32 %v1708_v32, %v1555_v35 }
 0x119   :  { %v1769_v57 = vpop.permute.xlu1 %467  ;;  %v1771_v52 = vpop.permute.xlu0 %462  ;;  %933 = vperm.xlu0 %1326, %v1475_v7   ;;  %v480_v54 = vadd.f32 %v1656_v34, %v288_v27  ;;  %v293_v27 = vmul.f32 %v1708_v32, %v1565_v39 }
 0x11b   :  { %1307 = vset.pattern.permute.xlu1 %v2160_v46 }
 0x11c   :  { %749 = vperm.xlu1 %1307, %v1489_v12  }
 0x11d   :  { %v1777_v13 = vpop.permute.xlu1 %477  ;;  %v1779_v11 = vpop.permute.xlu0 %472  ;;  %993 = vperm.xlu0 %1326, %v1525_v24  }
 0x120   :  { %1308 = vset.pattern.permute.xlu1 %v2157_v58 }
 0x121   :  { %609 = vperm.xlu1 %1308, %v1531_v26   ;;  %929 = vperm.xlu0 %1326, %v1477_v8  }
 0x122   :  { %v1790_v42 = vpop.permute.xlu1 %517  ;;  %v514_v12 = vpop.permute.xlu0 %513 }
 0x123   :  { %2170 = vst [vmem:[#allocation37_spill] sm:$0xff] %v1790_v42  ;;  %v644_v30 = vmul.f32 %v1785_v28, %v514_v12  ;;  %v483_v42 = vadd.f32 %v1660_v53, %v291_v29  ;;  %v295_v53 = vmul.f32 %v1708_v32, %v1571_v41 }
 0x125   :  { %v1796_v35 = vadd.f32 %v644_v30, %v480_v54  ;;  %1309 = vset.pattern.permute.xlu1 %v2160_v46  ;;  %925 = vperm.xlu0 %1326, %v1469_v5   ;;  %v485_v30 = vadd.f32 %v1666_v55, %v293_v27  ;;  %v297_v55 = vmul.f32 %v1708_v32, %v1577_v43 }
 0x126   :  { %809 = vperm.xlu1 %1309, %v1529_v25   ;;  %v1801_v26 = vpop.permute.xlu1 %521  ;;  %v526_v33 = vpop.permute.xlu0 %525 }
 0x127   :  { %2171 = vst [vmem:[#allocation38_spill] sm:$0xff] %v1796_v35  ;;  %2172 = vst [vmem:[#allocation39_spill] sm:$0xff] %v1801_v26  ;;  %v647_v34 = vmul.f32 %v1785_v28, %v526_v33  ;;  %v489_v27 = vadd.f32 %v1680_v44, %v297_v55 }
 0x129   :  { %v1807_v12 = vadd.f32 %v647_v34, %v483_v42  ;;  %985 = vperm.xlu0 %1326, %v1519_v22  }
 0x12a   :  { %745 = vperm.xlu1 %1309, %v1481_v9   ;;  %v1811_v36 = vpop.permute.xlu1 %529  ;;  %v534_v54 = vpop.permute.xlu0 %533  ;;  %v487_v9 = vadd.f32 %v1673_v38, %v295_v53 }
 0x12b   :  { %2173 = vst [vmem:[#allocation40_spill] sm:$0xff] %v1807_v12  ;;  %2174 = vst [vmem:[#allocation41_spill] sm:$0xff] %v1811_v36  ;;  %v649_v35 = vmul.f32 %v1785_v28, %v534_v54 }
 0x12d   :  { %v1817_v29 = vadd.f32 %v649_v35, %v485_v30  ;;  %921 = vperm.xlu0 %1326, %v1471_v6  }
 0x12e   :  { %1310 = vset.pattern.permute.xlu1 %v2157_v58  ;;  %v1821_v39 = vpop.permute.xlu1 %537  ;;  %v542_v42 = vpop.permute.xlu0 %541 }
 0x12f   :  { %2175 = vst [vmem:[#allocation42_spill] sm:$0xff] %v1817_v29  ;;  %2176 = vst [vmem:[#allocation43_spill] sm:$0xff] %v1821_v39  ;;  %v651_v33 = vmul.f32 %v1785_v28, %v542_v42  ;;  %605 = vperm.xlu1 %1310, %v1523_v23  }
 0x131   :  { %v1828_v34 = vadd.f32 %v651_v33, %v487_v9  ;;  %917 = vperm.xlu0 %1326, %v1463_v3   ;;  %v299_v9 = vmul.f32 %v1708_v32, %v1583_v45  ;;  %v838_v45 = vsub.s32 2, %v1686_v16 }
 0x132   :  { %v1831_v41 = vpop.permute.xlu1 %545  ;;  %v550_v35 = vpop.permute.xlu0 %549 }
 0x133   :  { %v653_v54 = vmul.f32 %v1785_v28, %v550_v35  ;;  %1311 = vset.pattern.permute.xlu1 %v2154_v56  ;;  %v491_v33 = vadd.f32 %v1689_v51, %v299_v9  ;;  %v319_v51 = vmul.f32 %v1708_v32, %v1647_v31 }
 0x134   :  { %1005 = vperm.xlu1 %1311, %v1529_v25  }
 0x135   :  { %v1837_v38 = vadd.f32 %v653_v54, %v489_v27  ;;  %977 = vperm.xlu0 %1326, %v1513_v20   ;;  %v1034_v27 = vsub.s32 3, %v1686_v16  ;;  %v511_v16 = vadd.f32 %v1777_v13, %v319_v51 }
 0x136   :  { %v638_v43 = vpop.permute.xlu1 %637  ;;  %v1840_v30 = vpop.permute.xlu0 %573 }
 0x137   :  { %v675_v9 = vmul.f32 %v1785_v28, %v638_v43 }
 0x138   :  { %1312 = vset.pattern.permute.xlu1 %v2160_v46 }
 0x139   :  { %741 = vperm.xlu1 %1312, %v1483_v10   ;;  %913 = vperm.xlu0 %1326, %v1457_v1  }
 0x13a   :  { %v1845_v44 = vpop.permute.xlu1 %633  ;;  %v1847_v53 = vpop.permute.xlu0 %629 }
 0x13d   :  { %1313 = vset.pattern.permute.xlu1 %v2157_v58  ;;  %973 = vperm.xlu0 %1326, %v1505_v17  }
 0x13e   :  { %601 = vperm.xlu1 %1313, %v1525_v24   ;;  %v1852_v25 = vpop.permute.xlu1 %569  ;;  %v1854_v42 = vpop.permute.xlu0 %565 }
 0x141   :  { %909 = vperm.xlu0 %1326, %v1465_v4  }
 0x142   :  { %1314 = vset.pattern.permute.xlu1 %v2160_v46  ;;  %v558_v10 = vpop.permute.xlu0 %557 }
 0x143   :  { %v655_v55 = vmul.f32 %v1785_v28, %v558_v10  ;;  %801 = vperm.xlu1 %1314, %v1523_v23   ;;  %v770_v35 = vpop.permute.xlu1 %769 }
 0x145   :  { %v1863_v24 = vadd.f32 %v655_v55, %v491_v33  ;;  %905 = vperm.xlu0 %1326, %v1459_v2   ;;  %v1877_v33 = vrot.slane %v1699_v15, %v1034_v27  ;;  %v2177_v2 = vmov 0   ;;  %v1882_v55 = vrot.slane %v1699_v15, %v838_v45 }
 0x146   :  { %v618_v54 = vpop.permute.xlu0 %617 }
 0x147   :  { %v670_v4 = vmul.f32 %v1785_v28, %v618_v54  ;;  %737 = vperm.xlu1 %1314, %v1475_v7   ;;  %v830_v26 = vpop.permute.xlu1 %829  ;;  %v707_v54 = vadd.f32 %v675_v9, %v511_v16  ;;  %v855_v12 = vmul.f32 %v1882_v55, %v770_v35 }
 0x149   :  { %v1874_v10 = vadd.f32 %v670_v4, %v1765_v62  ;;  %1333 = vset.pattern.permute.xlu0 %v2177_v2 }
 0x14b   :  { %1315 = vset.pattern.permute.xlu1 %v2157_v58  ;;  %v834_v7 = vpop.permute.xlu0 %833 }
 0x14c   :  { %v871_v31 = vmul.f32 %v1882_v55, %v834_v7  ;;  %597 = vperm.xlu1 %1315, %v1517_v21   ;;  %v1030_v62 = vpop.permute.xlu1 %1029 }
 0x14d   :  { %v1067_v43 = vmul.f32 %v1877_v33, %v1030_v62 }
 0x14e   :  { %v903_v27 = vadd.f32 %v871_v31, %v707_v54 }
 0x14f   :  { %v1888_v4 = vpop.permute.xlu0 %761 }
 0x150   :  { %1316 = vset.pattern.permute.xlu1 %v2154_v56  ;;  %v1099_v13 = vadd.f32 %v1067_v43, %v903_v27  ;;  %v303_v43 = vmul.f32 %v1708_v32, %v1595_v49  ;;  %v674_v49 = vmul.f32 %v1785_v28, %v1845_v44 }
 0x151   :  { %997 = vperm.xlu1 %1316, %v1523_v23   ;;  %v766_v15 = vpop.permute.xlu1 %765 }
 0x152   :  { %v1131_v45 = vmax.f32 %v1099_v13, 0.0  ;;  %v302_v13 = vmul.f32 %v1708_v32, %v1597_v50  ;;  %v317_v50 = vmul.f32 %v1708_v32, %v1640_v0  ;;  %v854_v44 = vmul.f32 %v1882_v55, %v766_v15 }
 0x153   :  { %v1892_v51 = vpop.permute.xlu0 %821  ;;  %v316_v15 = vmul.f32 %v1708_v32, %v1642_v60 }
 0x154   :  { %1242 = vmatprep.subr.mxu0 %v1131_v45  ;;  %v495_v45 = vadd.f32 %v1710_v40, %v303_v43  ;;  %v673_v40 = vmul.f32 %v1785_v28, %v1847_v53  ;;  %v494_v35 = vadd.f32 %v1714_v61, %v302_v13 }
 0x155   :  { %1317 = vset.pattern.permute.xlu1 %v2160_v46  ;;  %v508_v60 = vadd.f32 %v1771_v52, %v316_v15  ;;  %v2181_v52 = vld [vmem:[#allocation29_spill] sm:$0xff] }
 0x156   :  { %733 = vperm.xlu1 %1317, %v1477_v8   ;;  %v626_v9 = vpop.permute.xlu1 %625 }
 0x157   :  { %v1896_v16 = vpop.permute.xlu0 %813 }
 0x15a   :  { %1318 = vset.pattern.permute.xlu1 %v2157_v58 }
 0x15b   :  { %593 = vperm.xlu1 %1318, %v1519_v22   ;;  %v826_v7 = vpop.permute.xlu1 %825  ;;  %v1900_v54 = vpop.permute.xlu0 %805  ;;  %v659_v22 = vmul.f32 %v1785_v28, %v1840_v30  ;;  %v658_v30 = vmul.f32 %v1785_v28, %v1852_v25  ;;  %v509_v25 = vadd.f32 %v1769_v57, %v317_v50 }
 0x15c   :  { %v869_v39 = vmul.f32 %v1882_v55, %v826_v7 }
 0x15d   :  { %v691_v36 = vadd.f32 %v659_v22, %v495_v45  ;;  %v690_v53 = vadd.f32 %v658_v30, %v494_v35  ;;  %v2180_v35 = vld [vmem:[#allocation28_spill] sm:$0xff] }
 0x15f   :  { %1319 = vset.pattern.permute.xlu1 %v2160_v46  ;;  %v1903_v23 = vpop.permute.xlu0 %797 }
 0x160   :  { %793 = vperm.xlu1 %1319, %v1517_v21   ;;  %v562_v31 = vpop.permute.xlu1 %561 }
 0x163   :  { %v1906_v62 = vpop.permute.xlu0 %789 }
 0x164   :  { %2178 = vst [vmem:[#allocation44_spill] sm:$0xff] %v1906_v62  ;;  %729 = vperm.xlu1 %1319, %v1469_v5   ;;  %v318_v5 = vmul.f32 %v1708_v32, %v1649_v37  ;;  %v870_v37 = vmul.f32 %v1882_v55, %v830_v26  ;;  %v887_v62 = vadd.f32 %v855_v12, %v691_v36 }
 0x165   :  { %v962_v8 = vpop.permute.xlu1 %961  ;;  %v886_v12 = vadd.f32 %v854_v44, %v690_v53 }
 0x166   :  { %v510_v43 = vadd.f32 %v1779_v11, %v318_v5  ;;  %v1050_v61 = vmul.f32 %v1877_v33, %v962_v8  ;;  %v705_v11 = vadd.f32 %v673_v40, %v509_v25 }
 0x167   :  { %v1913_v27 = vpop.permute.xlu0 %781 }
 0x168   :  { %2179 = vst [vmem:[#allocation45_spill] sm:$0xff] %v1913_v27  ;;  %1320 = vset.pattern.permute.xlu1 %v2157_v58  ;;  %v706_v22 = vadd.f32 %v674_v49, %v510_v43  ;;  %v901_v45 = vadd.f32 %v869_v39, %v705_v11  ;;  %v1082_v8 = vadd.f32 %v1050_v61, %v886_v12 }
 0x169   :  { %589 = vperm.xlu1 %1320, %v1511_v19   ;;  %v657_v39 = vmul.f32 %v1785_v28, %v1854_v42 }
 0x16a   :  { %v1927_v27 = vpop.permute.xlu1 %621  ;;  %v902_v57 = vadd.f32 %v870_v37, %v706_v22 }
 0x16c   :  { %v966_v29 = vpop.permute.xlu0 %965 }
 0x16d   :  { %v1051_v0 = vmul.f32 %v1877_v33, %v966_v29  ;;  %1321 = vset.pattern.permute.xlu1 %v2154_v56  ;;  %v672_v29 = vmul.f32 %v1785_v28, %v626_v9  ;;  %v656_v9 = vmul.f32 %v1785_v28, %v562_v31 }
 0x16e   :  { %989 = vperm.xlu1 %1321, %v1517_v21   ;;  %v301_v21 = vmul.f32 %v1708_v32, %v1589_v47 }
 0x16f   :  { %v1022_v26 = vpop.permute.xlu1 %1021  ;;  %v1083_v13 = vadd.f32 %v1051_v0, %v887_v62  ;;  %v300_v62 = vmul.f32 %v1708_v32, %v1591_v48  ;;  %v868_v48 = vmul.f32 %v1882_v55, %v1892_v51  ;;  %v704_v37 = vadd.f32 %v672_v29, %v508_v60  ;;  %v2182_v60 = vld [vmem:[#allocation21_spill] sm:$0xff] }
 0x170   :  { %v1065_v36 = vmul.f32 %v1877_v33, %v1022_v26  ;;  %v1026_v7 = vpop.permute.xlu0 %1025  ;;  %v493_v43 = vadd.f32 %v2180_v35, %v301_v21  ;;  %v1114_v0 = vmax.f32 %v1082_v8, 0.0 }
 0x171   :  { %v1066_v5 = vmul.f32 %v1877_v33, %v1026_v7  ;;  %v1115_v49 = vmax.f32 %v1083_v13, 0.0  ;;  %v492_v25 = vadd.f32 %v2181_v52, %v300_v62  ;;  %v900_v11 = vadd.f32 %v868_v48, %v704_v37  ;;  %v2183_v48 = vld [vmem:[#allocation15_spill] sm:$0xff] }
 0x172   :  { %1322 = vset.pattern.permute.xlu1 %v2160_v46  ;;  %v1097_v30 = vadd.f32 %v1065_v36, %v901_v45  ;;  %v689_v53 = vadd.f32 %v657_v39, %v493_v43  ;;  %v298_v37 = vmul.f32 %v1708_v32, %v2183_v48 }
 0x173   :  { %v1098_v50 = vadd.f32 %v1066_v5, %v902_v57  ;;  %725 = vperm.xlu1 %1322, %v1471_v6   ;;  %1243 = vmatpush3.msra.mxu0 %v1115_v49  ;;  %v853_v6 = vmul.f32 %v1882_v55, %v1888_v4  ;;  %v688_v61 = vadd.f32 %v656_v9, %v492_v25 }
 0x174   :  { %v758_v40 = vpop.permute.xlu1 %757  ;;  %v1018_v47 = vpop.permute.xlu0 %1017  ;;  %v1129_v42 = vmax.f32 %v1097_v30, 0.0  ;;  %v315_v30 = vmul.f32 %v1708_v32, %v2182_v60 }
 0x175   :  { %v1130_v44 = vmax.f32 %v1098_v50, 0.0  ;;  %v852_v22 = vmul.f32 %v1882_v55, %v758_v40  ;;  %v1064_v31 = vmul.f32 %v1877_v33, %v1018_v47  ;;  %v885_v4 = vadd.f32 %v853_v6, %v689_v53 }
 0x176   :  { %v507_v9 = vadd.f32 %v1762_v63, %v315_v30  ;;  %v866_v40 = vmul.f32 %v1882_v55, %v1896_v16 }
 0x177   :  { %1323 = vset.pattern.permute.xlu1 %v2157_v58  ;;  %1244 = vmatprep.subr.mxu0 %v1130_v44  ;;  %v884_v15 = vadd.f32 %v852_v22, %v688_v61  ;;  %v1096_v12 = vadd.f32 %v1064_v31, %v900_v11  ;;  %v2185_v22 = vld [vmem:[#allocation27_spill] sm:$0xff] }
 0x178   :  { %585 = vperm.xlu1 %1323, %v1513_v20   ;;  %v954_v51 = vpop.permute.xlu0 %953  ;;  %1245 = vmatpush3.msra.mxu0 %v1114_v0  ;;  %v898_v44 = vadd.f32 %v866_v40, %v1874_v10  ;;  %v1133_v40 = vld [vmem:[%s2127_s3 + $0x8] sm:$0xff] }
 0x179   :  { %v1048_v26 = vmul.f32 %v1877_v33, %v954_v51  ;;  %v958_v13 = vpop.permute.xlu1 %957  ;;  %1246 = vmatprep.subr.mxu0 %v1129_v42  ;;  %v1128_v45 = vmax.f32 %v1096_v12, 0.0  ;;  %v490_v42 = vadd.f32 %v2185_v22, %v298_v37  ;;  %1204 = vmatprep.mubr.f32.mxu0 %v1133_v40 }
 0x17a   :  { %v1049_v57 = vmul.f32 %v1877_v33, %v958_v13 }
 0x17b   :  { %v1080_v36 = vadd.f32 %v1048_v26, %v884_v15 }
 0x17c   :  { %v1081_v7 = vadd.f32 %v1049_v57, %v885_v4  ;;  %1324 = vset.pattern.permute.xlu1 %v2160_v46  ;;  %v950_v21 = vpop.permute.xlu0 %949  ;;  %v864_v57 = vmul.f32 %v1882_v55, %v1900_v54 }
 0x17d   :  { %785 = vperm.xlu1 %1324, %v1511_v19   ;;  %v1112_v5 = vmax.f32 %v1080_v36, 0.0 }
 0x17e   :  { %v1113_v29 = vmax.f32 %v1081_v7, 0.0  ;;  %v818_v20 = vpop.permute.xlu1 %817  ;;  %v1340_v7 = vld [vmem:[#allocation2 + $0x8] sm:$0xff] }
 0x17f   :  { %v867_v47 = vmul.f32 %v1882_v55, %v818_v20 }
 0x180   :  { %1247 = vmatpush3.msra.mxu0 %v1113_v29  ;;  %v1010_v39 = vpop.permute.xlu0 %1009 }
 0x181   :  { %721 = vperm.xlu1 %1324, %v1463_v3   ;;  %1248 = vmatprep.subr.mxu0 %v1128_v45  ;;  %v671_v3 = vmul.f32 %v1785_v28, %v1927_v27  ;;  %v1062_v27 = vmul.f32 %v1877_v33, %v1010_v39  ;;  %v1341_v45 = vld [vmem:[#allocation2 + $0x80] sm:$0xff] }
 0x182   :  { %1249 = vmatpush3.msra.mxu0 %v1112_v5 }
 0x183   :  { %v554_v49 = vpop.permute.xlu1 %553  ;;  %v703_v43 = vadd.f32 %v671_v3, %v507_v9 }
 0x184   :  { %v654_v25 = vmul.f32 %v1785_v28, %v554_v49  ;;  %v946_v61 = vpop.permute.xlu0 %945  ;;  %v1342_v49 = vld [vmem:[#allocation2] sm:$0xff] }
 0x185   :  { %1325 = vset.pattern.permute.xlu1 %v2157_v58  ;;  %v899_v16 = vadd.f32 %v867_v47, %v703_v43  ;;  %v1046_v11 = vmul.f32 %v1877_v33, %v946_v61 }
 0x186   :  { %581 = vperm.xlu1 %1325, %v1505_v17   ;;  %v686_v51 = vadd.f32 %v654_v25, %v490_v42 }
 0x188   :  { %v754_v62 = vpop.permute.xlu1 %753 }
 0x189   :  { %v851_v8 = vmul.f32 %v1882_v55, %v754_v62  ;;  %v2186_v62 = vld [vmem:[#allocation20_spill] sm:$0xff] }
 0x18a   :  { %1327 = vset.pattern.permute.xlu1 %v2154_v56  ;;  %v313_v54 = vmul.f32 %v1708_v32, %v2186_v62 }
 0x18b   :  { %981 = vperm.xlu1 %1327, %v1511_v19   ;;  %v1047_v19 = vmul.f32 %v1877_v33, %v950_v21  ;;  %v883_v35 = vadd.f32 %v851_v8, %v1863_v24  ;;  %v1094_v24 = vadd.f32 %v1062_v27, %v898_v44  ;;  %v2188_v44 = vld [vmem:[#allocation26_spill] sm:$0xff] }
 0x18c   :  { %v505_v30 = vadd.f32 %v1753_v14, %v313_v54  ;;  %v1134_v14 = vld [vmem:[#allocation6] sm:$0xff] }
 0x18d   :  { %v614_v50 = vpop.permute.xlu1 %613  ;;  %v1079_v6 = vadd.f32 %v1047_v19, %v883_v35  ;;  %v1126_v13 = vmax.f32 %v1094_v24, 0.0  ;;  %v2187_v19 = vld [vmem:[#allocation14_spill] sm:$0xff] }
 0x18e   :  { %v669_v8 = vmul.f32 %v1785_v28, %v614_v50 }
 0x18f   :  { %1328 = vset.pattern.permute.xlu1 %v2160_v46  ;;  %v1111_v26 = vmax.f32 %v1079_v6, 0.0 }
 0x190   :  { %717 = vperm.xlu1 %1328, %v1457_v1   ;;  %v2184_v1 = vld [vmem:[#allocation9_spill] sm:$0xff]  ;;  %v701_v47 = vadd.f32 %v669_v8, %v505_v30  ;;  %v2192_v8 = vld [vmem:[#allocation43_spill] sm:$0xff] }
 0x192   :  { %v1014_v63 = vpop.permute.xlu1 %1013 }
 0x193   :  { %v1063_v52 = vmul.f32 %v1877_v33, %v1014_v63 }
 0x194   :  { %1329 = vset.pattern.permute.xlu1 %v2157_v58 }
 0x195   :  { %v1095_v0 = vadd.f32 %v1063_v52, %v899_v16  ;;  %577 = vperm.xlu1 %1329, %v2184_v1  }
 0x197   :  { %v1127_v31 = vmax.f32 %v1095_v0, 0.0  ;;  %v750_v53 = vpop.permute.xlu1 %749 }
 0x198   :  { %v850_v10 = vmul.f32 %v1882_v55, %v750_v53 }
 0x199   :  { %1330 = vset.pattern.permute.xlu1 %v2160_v46  ;;  %1250 = vmatprep.subr.mxu0 %v1127_v31 }
 0x19a   :  { %v882_v58 = vadd.f32 %v850_v10, %v686_v51  ;;  %777 = vperm.xlu1 %1330, %v1505_v17   ;;  %1251 = vmatpush3.msra.mxu0 %v1111_v26  ;;  %v942_v17 = vpop.permute.xlu0 %941  ;;  %v862_v51 = vmul.f32 %v1882_v55, %v1903_v23 }
 0x19b   :  { %1252 = vmatprep.subr.mxu0 %v1126_v13  ;;  %v1045_v39 = vmul.f32 %v1877_v33, %v942_v17 }
 0x19c   :  { %v1078_v4 = vadd.f32 %v1046_v11, %v882_v58  ;;  %v610_v15 = vpop.permute.xlu1 %609 }
 0x19d   :  { %v668_v12 = vmul.f32 %v1785_v28, %v610_v15  ;;  %v2189_v15 = vld [vmem:[#allocation19_spill] sm:$0xff] }
 0x19e   :  { %v1110_v36 = vmax.f32 %v1078_v4, 0.0  ;;  %713 = vperm.xlu1 %1330, %v1340_v7   ;;  %v2190_v7 = vld [vmem:[#allocation36_spill] sm:$0xff] }
 0x19f   :  { %v700_v29 = vadd.f32 %v668_v12, %v1757_v59  ;;  %v1002_v59 = vpop.permute.xlu0 %1001 }
 0x1a0   :  { %1253 = vmatpush3.msra.mxu0 %v1110_v36  ;;  %v1060_v50 = vmul.f32 %v1877_v33, %v1002_v59 }
 0x1a1   :  { %v896_v46 = vadd.f32 %v864_v57, %v700_v29  ;;  %v810_v20 = vpop.permute.xlu1 %809  ;;  %v311_v57 = vmul.f32 %v1708_v32, %v2189_v15 }
 0x1a2   :  { %773 = vperm.xlu1 %1330, %v1341_v45   ;;  %v865_v3 = vmul.f32 %v1882_v55, %v810_v20 }
 0x1a3   :  { %v1092_v37 = vadd.f32 %v1060_v50, %v896_v46  ;;  %v938_v52 = vpop.permute.xlu0 %937  ;;  %v503_v29 = vadd.f32 %v2190_v7, %v311_v57  ;;  %v2200_v7 = vld [vmem:[#allocation41_spill] sm:$0xff] }
 0x1a4   :  { %v897_v43 = vadd.f32 %v865_v3, %v701_v47  ;;  %v1044_v0 = vmul.f32 %v1877_v33, %v938_v52 }
 0x1a5   :  { %v746_v5 = vpop.permute.xlu1 %745  ;;  %v1124_v22 = vmax.f32 %v1092_v37, 0.0 }
 0x1a6   :  { %709 = vperm.xlu1 %1330, %v1342_v49   ;;  %v849_v21 = vmul.f32 %v1882_v55, %v746_v5  ;;  %v2191_v5 = vld [vmem:[#allocation13_spill] sm:$0xff] }
 0x1a7   :  { %v934_v58 = vpop.permute.xlu0 %933  ;;  %v294_v49 = vmul.f32 %v1708_v32, %v2191_v5 }
 0x1a8   :  { %v881_v9 = vadd.f32 %v849_v21, %v1837_v38  ;;  %v652_v38 = vmul.f32 %v1785_v28, %v1831_v41  ;;  %v1043_v23 = vmul.f32 %v1877_v33, %v934_v58 }
 0x1aa   :  { %v606_v60 = vpop.permute.xlu1 %605  ;;  %1331 = vset.pattern.permute.xlu1 %v2154_v56  ;;  %v296_v56 = vmul.f32 %v1708_v32, %v2187_v19  ;;  %v1077_v48 = vadd.f32 %v1045_v39, %v881_v9  ;;  %v2193_v39 = vld [vmem:[#allocation25_spill] sm:$0xff] }
 0x1ab   :  { %969 = vperm.xlu1 %1331, %v1341_v45   ;;  %v667_v12 = vmul.f32 %v1785_v28, %v606_v60  ;;  %v650_v60 = vmul.f32 %v1785_v28, %v2192_v8  ;;  %v486_v9 = vadd.f32 %v2193_v39, %v294_v49 }
 0x1ac   :  { %v488_v16 = vadd.f32 %v2188_v44, %v296_v56  ;;  %v1109_v1 = vmax.f32 %v1077_v48, 0.0 }
 0x1ad   :  { %v699_v45 = vadd.f32 %v667_v12, %v503_v29  ;;  %v682_v50 = vadd.f32 %v650_v60, %v486_v9  ;;  %v648_v29 = vmul.f32 %v1785_v28, %v2200_v7 }
 0x1ae   :  { %v684_v24 = vadd.f32 %v652_v38, %v488_v16  ;;  %v2195_v16 = vld [vmem:[#allocation35_spill] sm:$0xff] }
 0x1af   :  { %v1006_v35 = vpop.permute.xlu1 %1005  ;;  %1332 = vset.pattern.permute.xlu1 %v2177_v2 }
 0x1b0   :  { %v1061_v27 = vmul.f32 %v1877_v33, %v1006_v35  ;;  %1137 = vperm.xlu1 %1332, %v1134_v14  }
 0x1b2   :  { %v1093_v63 = vadd.f32 %v1061_v27, %v897_v43 }
 0x1b4   :  { %v1125_v25 = vmax.f32 %v1093_v63, 0.0  ;;  %v742_v6 = vpop.permute.xlu1 %741  ;;  %v2194_v63 = vld [vmem:[#allocation44_spill] sm:$0xff] }
 0x1b5   :  { %v848_v2 = vmul.f32 %v1882_v55, %v742_v6  ;;  %v860_v44 = vmul.f32 %v1882_v55, %v2194_v63  ;;  %v2205_v63 = vld [vmem:[#allocation32_spill] sm:$0xff] }
 0x1b6   :  { %1254 = vmatprep.subr.mxu0 %v1125_v25 }
 0x1b7   :  { %v880_v42 = vadd.f32 %v848_v2, %v684_v24  ;;  %1255 = vmatpush3.msra.mxu0 %v1109_v1  ;;  %v2196_v1 = vld [vmem:[#allocation18_spill] sm:$0xff] }
 0x1b8   :  { %1256 = vmatprep.subr.mxu0 %v1124_v22  ;;  %v309_v22 = vmul.f32 %v1708_v32, %v2196_v1 }
 0x1b9   :  { %v602_v41 = vpop.permute.xlu1 %601  ;;  %v1076_v31 = vadd.f32 %v1044_v0, %v880_v42 }
 0x1ba   :  { %v666_v53 = vmul.f32 %v1785_v28, %v602_v41 }
 0x1bb   :  { %v1108_v61 = vmax.f32 %v1076_v31, 0.0  ;;  %v2197_v31 = vld [vmem:[#allocation34_spill] sm:$0xff] }
 0x1bc   :  { %v698_v10 = vadd.f32 %v666_v53, %v1749_v18  ;;  %v994_v18 = vpop.permute.xlu0 %993  ;;  %v501_v53 = vadd.f32 %v2197_v31, %v309_v22  ;;  %v2207_v31 = vld [vmem:[#allocation10_spill] sm:$0xff] }
 0x1bd   :  { %1257 = vmatpush3.msra.mxu0 %v1108_v61  ;;  %v1058_v17 = vmul.f32 %v1877_v33, %v994_v18 }
 0x1be   :  { %v894_v11 = vadd.f32 %v862_v51, %v698_v10  ;;  %v802_v26 = vpop.permute.xlu1 %801  ;;  %v2198_v51 = vld [vmem:[#allocation42_spill] sm:$0xff] }
 0x1bf   :  { %v863_v46 = vmul.f32 %v1882_v55, %v802_v26  ;;  %v2199_v26 = vld [vmem:[#allocation12_spill] sm:$0xff] }
 0x1c0   :  { %v1090_v3 = vadd.f32 %v1058_v17, %v894_v11  ;;  %v930_v40 = vpop.permute.xlu0 %929 }
 0x1c1   :  { %v895_v62 = vadd.f32 %v863_v46, %v699_v45  ;;  %v1042_v19 = vmul.f32 %v1877_v33, %v930_v40  ;;  %v2202_v40 = vld [vmem:[#allocation45_spill] sm:$0xff] }
 0x1c2   :  { %v738_v13 = vpop.permute.xlu1 %737  ;;  %v1122_v14 = vmax.f32 %v1090_v3, 0.0 }
 0x1c3   :  { %v847_v4 = vmul.f32 %v1882_v55, %v738_v13  ;;  %v292_v13 = vmul.f32 %v1708_v32, %v2199_v26  ;;  %v2209_v26 = vld [vmem:[#allocation23_spill] sm:$0xff] }
 0x1c4   :  { %v926_v0 = vpop.permute.xlu0 %925 }
 0x1c5   :  { %v879_v20 = vadd.f32 %v847_v4, %v1828_v34  ;;  %v1041_v58 = vmul.f32 %v1877_v33, %v926_v0 }
 0x1c7   :  { %v598_v36 = vpop.permute.xlu1 %597  ;;  %v1075_v59 = vadd.f32 %v1043_v23, %v879_v20  ;;  %v2201_v20 = vld [vmem:[#allocation24_spill] sm:$0xff] }
 0x1c8   :  { %v665_v42 = vmul.f32 %v1785_v28, %v598_v36  ;;  %v986_v4 = vpop.permute.xlu0 %985  ;;  %v484_v45 = vadd.f32 %v2201_v20, %v292_v13  ;;  %v2210_v20 = vld [vmem:[#allocation16_spill] sm:$0xff] }
 0x1c9   :  { %v1107_v35 = vmax.f32 %v1075_v59, 0.0  ;;  %v1056_v57 = vmul.f32 %v1877_v33, %v986_v4 }
 0x1ca   :  { %v697_v11 = vadd.f32 %v665_v42, %v501_v53  ;;  %v680_v49 = vadd.f32 %v648_v29, %v484_v45  ;;  %v2208_v53 = vld [vmem:[#allocation39_spill] sm:$0xff]  ;;  %v305_v45 = vmul.f32 %v1708_v32, %v2210_v20 }
 0x1cc   :  { %v998_v21 = vpop.permute.xlu1 %997 }
 0x1cd   :  { %v1059_v54 = vmul.f32 %v1877_v33, %v998_v21 }
 0x1cf   :  { %v1091_v30 = vadd.f32 %v1059_v54, %v895_v62  ;;  %v922_v54 = vpop.permute.xlu0 %921 }
 0x1d0   :  { %v1040_v60 = vmul.f32 %v1877_v33, %v922_v54 }
 0x1d1   :  { %v1123_v34 = vmax.f32 %v1091_v30, 0.0  ;;  %v734_v47 = vpop.permute.xlu1 %733 }
 0x1d2   :  { %v846_v56 = vmul.f32 %v1882_v55, %v734_v47  ;;  %v2203_v47 = vld [vmem:[#allocation33_spill] sm:$0xff] }
 0x1d3   :  { %1258 = vmatprep.subr.mxu0 %v1123_v34  ;;  %v858_v34 = vmul.f32 %v1882_v55, %v2202_v40 }
 0x1d4   :  { %v878_v43 = vadd.f32 %v846_v56, %v682_v50  ;;  %1259 = vmatpush3.msra.mxu0 %v1107_v35 }
 0x1d5   :  { %1260 = vmatprep.subr.mxu0 %v1122_v14  ;;  %v918_v14 = vpop.permute.xlu0 %917 }
 0x1d6   :  { %v594_v27 = vpop.permute.xlu1 %593  ;;  %v1074_v38 = vadd.f32 %v1042_v19, %v878_v43 }
 0x1d7   :  { %v664_v48 = vmul.f32 %v1785_v28, %v594_v27  ;;  %v2204_v27 = vld [vmem:[#allocation17_spill] sm:$0xff] }
 0x1d8   :  { %v1106_v37 = vmax.f32 %v1074_v38, 0.0  ;;  %v307_v38 = vmul.f32 %v1708_v32, %v2204_v27 }
 0x1d9   :  { %v696_v52 = vadd.f32 %v664_v48, %v2195_v16  ;;  %v978_v0 = vpop.permute.xlu0 %977 }
 0x1da   :  { %1261 = vmatpush3.msra.mxu0 %v1106_v37  ;;  %v1054_v1 = vmul.f32 %v1877_v33, %v978_v0  ;;  %v2216_v0 = vld [vmem:[#allocation31_spill] sm:$0xff] }
 0x1db   :  { %v892_v25 = vadd.f32 %v860_v44, %v696_v52  ;;  %v794_v6 = vpop.permute.xlu1 %793  ;;  %v499_v44 = vadd.f32 %v2205_v63, %v307_v38  ;;  %v2206_v52 = vld [vmem:[#allocation40_spill] sm:$0xff] }
 0x1dc   :  { %v861_v61 = vmul.f32 %v1882_v55, %v794_v6 }
 0x1dd   :  { %v1088_v18 = vadd.f32 %v1056_v57, %v892_v25 }
 0x1de   :  { %v893_v12 = vadd.f32 %v861_v61, %v697_v11  ;;  %v646_v61 = vmul.f32 %v1785_v28, %v2208_v53 }
 0x1df   :  { %v730_v24 = vpop.permute.xlu1 %729  ;;  %v1120_v8 = vmax.f32 %v1088_v18, 0.0 }
 0x1e0   :  { %v845_v2 = vmul.f32 %v1882_v55, %v730_v24  ;;  %v1039_v24 = vmul.f32 %v1877_v33, %v918_v14 }
 0x1e2   :  { %v877_v10 = vadd.f32 %v845_v2, %v2198_v51 }
 0x1e4   :  { %v590_v41 = vpop.permute.xlu1 %589  ;;  %v1073_v46 = vadd.f32 %v1041_v58, %v877_v10 }
 0x1e5   :  { %v663_v48 = vmul.f32 %v1785_v28, %v590_v41  ;;  %v290_v41 = vmul.f32 %v1708_v32, %v2207_v31 }
 0x1e6   :  { %v1105_v62 = vmax.f32 %v1073_v46, 0.0 }
 0x1e7   :  { %v695_v6 = vadd.f32 %v663_v48, %v499_v44  ;;  %v482_v13 = vadd.f32 %v2209_v26, %v290_v41 }
 0x1e9   :  { %v990_v15 = vpop.permute.xlu1 %989 }
 0x1ea   :  { %v1057_v36 = vmul.f32 %v1877_v33, %v990_v15  ;;  %v678_v15 = vadd.f32 %v646_v61, %v482_v13 }
 0x1ec   :  { %v1089_v23 = vadd.f32 %v1057_v36, %v893_v12  ;;  %v914_v36 = vpop.permute.xlu0 %913 }
 0x1ed   :  { %v1038_v29 = vmul.f32 %v1877_v33, %v914_v36 }
 0x1ee   :  { %v1121_v17 = vmax.f32 %v1089_v23, 0.0  ;;  %v726_v5 = vpop.permute.xlu1 %725 }
 0x1ef   :  { %v844_v21 = vmul.f32 %v1882_v55, %v726_v5 }
 0x1f0   :  { %1262 = vmatprep.subr.mxu0 %v1121_v17 }
 0x1f1   :  { %v876_v59 = vadd.f32 %v844_v21, %v680_v49  ;;  %1263 = vmatpush3.msra.mxu0 %v1105_v62  ;;  %v2211_v49 = vld [vmem:[#allocation11_spill] sm:$0xff]  ;;  %v2212_v62 = vld [vmem:[#allocation30_spill] sm:$0xff] }
 0x1f2   :  { %1264 = vmatprep.subr.mxu0 %v1120_v8  ;;  %v289_v21 = vmul.f32 %v1708_v32, %v2211_v49  ;;  %v497_v54 = vadd.f32 %v2212_v62, %v305_v45  ;;  %v974_v8 = vpop.permute.xlu0 %973 }
 0x1f3   :  { %v586_v30 = vpop.permute.xlu1 %585  ;;  %v1072_v3 = vadd.f32 %v1040_v60, %v876_v59  ;;  %v2213_v59 = vld [vmem:[#allocation37_spill] sm:$0xff] }
 0x1f4   :  { %v662_v39 = vmul.f32 %v1785_v28, %v586_v30  ;;  %v645_v30 = vmul.f32 %v1785_v28, %v2213_v59 }
 0x1f5   :  { %v1104_v9 = vmax.f32 %v1072_v3, 0.0 }
 0x1f6   :  { %v694_v50 = vadd.f32 %v662_v39, %v2203_v47 }
 0x1f7   :  { %1265 = vmatpush3.msra.mxu0 %v1104_v9  ;;  %v2214_v9 = vld [vmem:[#allocation22_spill] sm:$0xff] }
 0x1f8   :  { %v890_v19 = vadd.f32 %v858_v34, %v694_v50  ;;  %v786_v56 = vpop.permute.xlu1 %785  ;;  %v481_v40 = vadd.f32 %v2214_v9, %v289_v21  ;;  %v1053_v34 = vmul.f32 %v1877_v33, %v974_v8 }
 0x1f9   :  { %v859_v16 = vmul.f32 %v1882_v55, %v786_v56 }
 0x1fa   :  { %v1086_v11 = vadd.f32 %v1054_v1, %v890_v19  ;;  %v677_v19 = vadd.f32 %v645_v30, %v481_v40 }
 0x1fb   :  { %v891_v22 = vadd.f32 %v859_v16, %v695_v6  ;;  %v2215_v6 = vld [vmem:[#allocation38_spill] sm:$0xff] }
 0x1fc   :  { %v722_v35 = vpop.permute.xlu1 %721  ;;  %v1118_v7 = vmax.f32 %v1086_v11, 0.0 }
 0x1fd   :  { %v843_v43 = vmul.f32 %v1882_v55, %v722_v35  ;;  %v910_v35 = vpop.permute.xlu0 %909 }
 0x1fe   :  { %v1037_v14 = vmul.f32 %v1877_v33, %v910_v35 }
 0x1ff   :  { %v875_v25 = vadd.f32 %v843_v43, %v2206_v52 }
 0x201   :  { %v582_v37 = vpop.permute.xlu1 %581  ;;  %v1071_v51 = vadd.f32 %v1039_v24, %v875_v25  ;;  %v906_v52 = vpop.permute.xlu0 %905 }
 0x202   :  { %v661_v17 = vmul.f32 %v1785_v28, %v582_v37  ;;  %v1036_v1 = vmul.f32 %v1877_v33, %v906_v52 }
 0x203   :  { %v1103_v12 = vmax.f32 %v1071_v51, 0.0  ;;  %v1132_v51 = vld [vmem:[%s2127_s3] sm:$0xff] }
 0x204   :  { %v693_v3 = vadd.f32 %v661_v17, %v497_v54 }
 0x206   :  { %v982_v2 = vpop.permute.xlu1 %981 }
 0x207   :  { %v1055_v42 = vmul.f32 %v1877_v33, %v982_v2 }
 0x209   :  { %v1087_v10 = vadd.f32 %v1055_v42, %v891_v22 }
 0x20b   :  { %v1119_v58 = vmax.f32 %v1087_v10, 0.0  ;;  %v718_v4 = vpop.permute.xlu1 %717 }
 0x20c   :  { %v842_v57 = vmul.f32 %v1882_v55, %v718_v4 }
 0x20d   :  { %1266 = vmatprep.subr.mxu0 %v1119_v58 }
 0x20e   :  { %v874_v46 = vadd.f32 %v842_v57, %v678_v15  ;;  %1267 = vmatpush3.msra.mxu0 %v1103_v12 }
 0x20f   :  { %1268 = vmatprep.subr.mxu0 %v1118_v7 }
 0x210   :  { %v578_v23 = vpop.permute.xlu1 %577  ;;  %v1070_v18 = vadd.f32 %v1038_v29, %v874_v46 }
 0x211   :  { %v660_v63 = vmul.f32 %v1785_v28, %v578_v23 }
 0x212   :  { %v1102_v5 = vmax.f32 %v1070_v18, 0.0 }
 0x213   :  { %v692_v2 = vadd.f32 %v660_v63, %v2216_v0 }
 0x214   :  { %1269 = vmatpush3.msra.mxu0 %v1102_v5 }
 0x215   :  { %v778_v60 = vpop.permute.xlu1 %777 }
 0x216   :  { %v857_v39 = vmul.f32 %v1882_v55, %v778_v60 }
 0x218   :  { %v889_v47 = vadd.f32 %v857_v39, %v693_v3 }
 0x219   :  { %v714_v50 = vpop.permute.xlu1 %713 }
 0x21a   :  { %v841_v32 = vmul.f32 %v1882_v55, %v714_v50  ;;  %v1085_v56 = vadd.f32 %v1053_v34, %v889_v47 }
 0x21c   :  { %v873_v43 = vadd.f32 %v841_v32, %v677_v19  ;;  %v1117_v27 = vmax.f32 %v1085_v56, 0.0 }
 0x21d   :  { %v774_v38 = vpop.permute.xlu1 %773 }
 0x21e   :  { %1270 = vmatprep.subr.mxu0 %v1117_v27  ;;  %v1069_v48 = vadd.f32 %v1037_v14, %v873_v43  ;;  %v856_v25 = vmul.f32 %v1882_v55, %v774_v38 }
 0x220   :  { %v1101_v37 = vmax.f32 %v1069_v48, 0.0  ;;  %v888_v42 = vadd.f32 %v856_v25, %v692_v2 }
 0x221   :  { %v710_v44 = vpop.permute.xlu1 %709 }
 0x222   :  { %v840_v16 = vmul.f32 %v1882_v55, %v710_v44  ;;  %1271 = vmatpush3.msra.mxu0 %v1101_v37 }
 0x224   :  { %v872_v24 = vadd.f32 %v840_v16, %v2215_v6 }
 0x226   :  { %v970_v22 = vpop.permute.xlu1 %969  ;;  %v1068_v41 = vadd.f32 %v1036_v1, %v872_v24 }
 0x227   :  { %v1052_v31 = vmul.f32 %v1877_v33, %v970_v22 }
 0x228   :  { %v1100_v61 = vmax.f32 %v1068_v41, 0.0 }
 0x229   :  { %v1084_v53 = vadd.f32 %v1052_v31, %v888_v42 }
 0x22b   :  { %v1116_v28 = vmax.f32 %v1084_v53, 0.0  ;;  %v1138_v11 = vpop.permute.xlu1 %1137 }
 0x22d   :  { %1272 = vmatprep.subr.mxu0 %v1116_v28 }
 0x22e   :  { %1273 = vmatpush3.msra.mxu0 %v1100_v61 }
 0x22f   :  { %1205 = vmatmul.mubr.f32.vlgmr.msra.gmra.mxu0 %v1132_v51 }
 0x2ef   :  { %v1274_v55 = vpop.f32.mrf.mxu0 }
 0x2f1   :  { %v1275_v10 = vpop.f32.mrf.mxu0 }
 0x2f2   :  { %v1276_v26 = vadd.f32 %v1275_v10, %v1274_v55 }
 0x2f4   :  { %v1207_v13 = vadd.f32 %v1276_v26, %v1138_v11 }
 0x2f6   :  { %v1211_v58 = vrot.slane %v1207_v13, 1  ;;  %1228 = vst [vmem:[%s2129_s5] sm:$0xff] %v1207_v13 }
 0x2f8   :  { %v1213_v33 = vmax.f32 %v1207_v13, %v1211_v58 }
 0x2fa   :  { %v1214_v4 = vsub.f32 %v1207_v13, %v1213_v33  ;;  %v1218_v15 = vrot.slane %v1213_v33, 7 }
 0x2fc   :  { %v1220_v57 = vsub.f32 %v1207_v13, %v1218_v15  ;;  %v1215_v12 = vmul.f32 1.442695, %v1214_v4 }
 0x2fe   :  { %v1221_v36 = vmul.f32 1.442695, %v1220_v57 }
 0x300   :  { %1334 = vpow2.f32 %v1221_v36 }
 0x301   :  { %1336 = vpow2.f32 %v1215_v12 }
 0x30d   :  { %v1335_v7 = vpop.eup %1334 }
 0x30e   :  { %v1224_v29 = vrot.slane %v1335_v7, 1  ;;  %v1337_v46 = vpop.eup %1336 }
 0x310   :  { %v1226_v23 = vadd.f32 %v1337_v46, %v1224_v29 }
 0x312   :  { %1338 = vrcp.f32 %v1226_v23 }
 0x31f   :  { %v1339_v18 = vpop.eup %1338 }
 0x320   :  { %v1229_v20 = vmul.f32 %v1339_v18, %v1337_v46  ;;  %v1232_v45 = vrot.slane %v1339_v18, 7 }
 0x322   :  { %1230 = vst [vmem:[%s2129_s5] sm:$0x1] %v1229_v20  ;;  %v1234_v17 = vmul.f32 %v1335_v7, %v1232_v45 }
 0x324   :  { %1235 = vst [vmem:[%s2129_s5] sm:$0x2] %v1234_v17 }
 0x325   :  { %1240 = vsyncpa [#allocation3], 1 }
 0x326   :  { %1241 = vsyncpa [#allocation5], 1 }

</bundles_post_ra>
